<compile_context>
chip_gen: v6e
topology: v6e:2x2x1
jax: 0.10.0
libtpu: 0.0.40
codegen_flags: <defaults>
</compile_context>

<pallas_src>
import jax
import jax.numpy as jnp
from jax.experimental import pallas as pl
from jax.experimental.pallas import tpu as pltpu


def _round_up(x, m):
    return ((x + m - 1) // m) * m


def _disc_kernel(x_ref, w1_ref, b1_ref, w2_ref, b2_ref, w3_ref, b3_ref, o_ref):
    x = x_ref[...]

    h1 = jnp.dot(x, w1_ref[...], preferred_element_type=jnp.float32) + b1_ref[...]
    h1 = jnp.maximum(h1, 0.0)

    h2 = jnp.dot(h1.astype(w2_ref.dtype), w2_ref[...],
                 preferred_element_type=jnp.float32) + b2_ref[...]
    h2 = jnp.maximum(h2, 0.0)

    # TODO(synk): the (M, C2) x (C2, 2) epilogue matmul could be a VPU
    # multiply+lane-reduce to skip the MXU result-FIFO pop; kept as dot for
    # simplicity (it is not the bottleneck — the kernel is x-stream bound).
    h3 = jnp.dot(h2.astype(w3_ref.dtype), w3_ref[...],
                 preferred_element_type=jnp.float32) + b3_ref[...]
    h3 = jnp.maximum(h3, 0.0)

    o_ref[...] = h3.astype(o_ref.dtype)


def discriminator_forward(x, params, *, batch_tile=None, input_dtype=None):
    """x: (B, C). params: dict with w1,b1,w2,b2,w3,b3 (weights stored as (in, out))."""
    B, C = x.shape
    w1, b1 = params["w1"], params["b1"]   # (C,  C1), (1, C1)
    w2, b2 = params["w2"], params["b2"]   # (C1, C2), (1, C2)
    w3, b3 = params["w3"], params["b3"]   # (C2, C3), (1, C3)
    C1, C2, C3 = w1.shape[1], w2.shape[1], w3.shape[1]

    # Optional narrow dtype for the HBM-bound x stream (v5e/v6e win). Biases
    # stay f32; accumulation is always f32 in-kernel.
    if input_dtype is not None:
        x = x.astype(input_dtype)
        w1 = w1.astype(input_dtype)
        w2 = w2.astype(input_dtype)
        w3 = w3.astype(input_dtype)

    elt = jnp.dtype(x.dtype).itemsize

    if batch_tile is None:
        # Cap the x tile at ~4 MiB so 2x double-buffered input + activations fit
        # comfortably inside the default scoped-VMEM limit on every chip.
        vmem_cap_rows = max(8, (4 * 1024 * 1024) // max(1, C * elt))
        if B <= 2048:
            batch_tile = max(8, _round_up(B, 8))              # single big tile
        else:
            # Keep >= 4 grid steps for megacore sharding / pipeline overlap.
            batch_tile = min(2048, _round_up(pl.cdiv(B, 4), 256))
        batch_tile = min(batch_tile, _round_up(vmem_cap_rows, 8))
    batch_tile = max(8, _round_up(batch_tile, 8))             # f32 sublane granule

    # Pad batch to a tile multiple (padded rows are sliced off afterwards).
    Bp = _round_up(B, batch_tile)
    if Bp != B:
        x = jnp.pad(x, ((0, Bp - B), (0, 0)))
    grid = (Bp // batch_tile,)

    # Weights / biases are tiny: constant index_map -> resident in VMEM.
    rep2 = lambda shape: pl.BlockSpec(shape, lambda i: (0, 0))

    cost = pl.CostEstimate(
        flops=2 * Bp * (C * C1 + C1 * C2 + C2 * C3),
        transcendentals=0,
        bytes_accessed=(Bp * C * elt                          # x stream (dominant)
                        + Bp * C3 * 4                         # output
                        + (C * C1 + C1 * C2 + C2 * C3) * elt  # weights (once)
                        + (C1 + C2 + C3) * 4),                # biases
    )

    out = pl.pallas_call(
        _disc_kernel,
        out_shape=jax.ShapeDtypeStruct((Bp, C3), jnp.float32),
        grid_spec=pltpu.PrefetchScalarGridSpec(
            num_scalar_prefetch=0,
            grid=grid,
            in_specs=[
                pl.BlockSpec((batch_tile, C), lambda i: (i, 0)),  # x tile
                rep2((C, C1)), rep2((1, C1)),
                rep2((C1, C2)), rep2((1, C2)),
                rep2((C2, C3)), rep2((1, C3)),
            ],
            out_specs=pl.BlockSpec((batch_tile, C3), lambda i: (i, 0)),
        ),
        compiler_params=pltpu.CompilerParams(
            dimension_semantics=("parallel",),
        ),
        cost_estimate=cost,
    )(x, w1, b1, w2, b2, w3, b3)

    return out[:B] if Bp != B else out


def init_params(key, outputs_size, K=2):
    """Deterministic synthetic init mirroring the PyTorch module's shapes."""
    c0 = outputs_size
    c1 = c0 // K
    c2 = c1 // K
    ks = jax.random.split(key, 6)

    def dense(kw, kb, cin, cout):
        # Stored as (in, out) == transpose of PyTorch conv weight (out, in, 1, 1).
        w = jax.random.normal(kw, (cin, cout), jnp.float32) * (1.0 / jnp.sqrt(cin))
        b = jax.random.normal(kb, (1, cout), jnp.float32) * 0.1
        return w, b

    w1, b1 = dense(ks[0], ks[1], c0, c1)
    w2, b2 = dense(ks[2], ks[3], c1, c2)
    w3, b3 = dense(ks[4], ks[5], c2, 2)
    return {"w1": w1, "b1": b1, "w2": w2, "b2": b2, "w3": w3, "b3": b3}


def reference_forward(x, p):
    """Pure-JAX reference of the PyTorch forward (1x1 convs on (B, C, 1, 1))."""
    h = jnp.maximum(x @ p["w1"] + p["b1"], 0.0)
    h = jnp.maximum(h @ p["w2"] + p["b2"], 0.0)
    h = jnp.maximum(h @ p["w3"] + p["b3"], 0.0)
    return h


if __name__ == "__main__":
    key = jax.random.PRNGKey(0)
    kx, kp = jax.random.split(key)

    B, outputs_size = 8, 32               # forward input: (B, outputs_size)
    x = jax.random.normal(kx, (B, outputs_size), jnp.float32)
    params = init_params(kp, outputs_size, K=2)

    out = discriminator_forward(x, params)
    out = jax.block_until_ready(out)
    ref = reference_forward(x, params)
    assert out.shape == (B, 2), out.shape
    assert jnp.allclose(out, ref, atol=1e-5, rtol=1e-5), "mismatch vs reference"

    # Exercise the non-tile-multiple batch path (padding + slice).
    B2 = 6
    x2 = jax.random.normal(jax.random.PRNGKey(1), (B2, outputs_size), jnp.float32)
    out2 = jax.block_until_ready(discriminator_forward(x2, params))
    ref2 = reference_forward(x2, params)
    assert out2.shape == (B2, 2), out2.shape
    assert jnp.allclose(out2, ref2, atol=1e-5, rtol=1e-5), "mismatch (padded batch)"

    print("KERNEL_OK")
</pallas_src>

<mosaic_0001>
module attributes {stable_mosaic.version = 11 : i64} {
  func.func @_disc_kernel(%arg0: i32, %arg1: memref<8x32xf32, #tpu.memory_space<vmem>>, %arg2: memref<32x16xf32, #tpu.memory_space<vmem>>, %arg3: memref<1x16xf32, #tpu.memory_space<vmem>>, %arg4: memref<16x8xf32, #tpu.memory_space<vmem>>, %arg5: memref<1x8xf32, #tpu.memory_space<vmem>>, %arg6: memref<8x2xf32, #tpu.memory_space<vmem>>, %arg7: memref<1x2xf32, #tpu.memory_space<vmem>>, %arg8: memref<8x2xf32, #tpu.memory_space<vmem>>) attributes {dimension_semantics = [#tpu.dimension_semantics<parallel>], iteration_bounds = array<i64: 1>, scalar_prefetch = 0 : i64, scratch_operands = 0 : i64, tpu.core_type = #tpu.core_type<tc>, window_params = [{transform_indices = @transform_0, window_bounds = array<i64: 8, 32>}, {pipeline_mode = #tpu.pipeline_mode<synchronous>, transform_indices = @transform_1, window_bounds = array<i64: 32, 16>}, {pipeline_mode = #tpu.pipeline_mode<synchronous>, transform_indices = @transform_2, window_bounds = array<i64: 1, 16>}, {pipeline_mode = #tpu.pipeline_mode<synchronous>, transform_indices = @transform_3, window_bounds = array<i64: 16, 8>}, {pipeline_mode = #tpu.pipeline_mode<synchronous>, transform_indices = @transform_4, window_bounds = array<i64: 1, 8>}, {pipeline_mode = #tpu.pipeline_mode<synchronous>, transform_indices = @transform_5, window_bounds = array<i64: 8, 2>}, {pipeline_mode = #tpu.pipeline_mode<synchronous>, transform_indices = @transform_6, window_bounds = array<i64: 1, 2>}, {transform_indices = @transform_7, window_bounds = array<i64: 8, 2>}]} {
    %c0 = arith.constant 0 : index
    %c0_0 = arith.constant 0 : index
    %0 = vector.load %arg1[%c0, %c0_0] : memref<8x32xf32, #tpu.memory_space<vmem>>, vector<8x32xf32>
    %c0_1 = arith.constant 0 : index
    %c0_2 = arith.constant 0 : index
    %1 = vector.load %arg2[%c0_1, %c0_2] : memref<32x16xf32, #tpu.memory_space<vmem>>, vector<32x16xf32>
    %cst = arith.constant dense<0.000000e+00> : vector<8x16xf32>
    %2 = tpu.matmul %0, %1, %cst {dimension_numbers = #tpu.dot_dimension_numbers<[1], [0], [0], [1], [0, 0, 1, 1], [], []>} : vector<8x32xf32>, vector<32x16xf32>, vector<8x16xf32> -> vector<8x16xf32>
    %c0_3 = arith.constant 0 : index
    %c0_4 = arith.constant 0 : index
    %3 = vector.load %arg3[%c0_3, %c0_4] : memref<1x16xf32, #tpu.memory_space<vmem>>, vector<1x16xf32>
    %4 = vector.broadcast %3 : vector<1x16xf32> to vector<8x16xf32>
    %5 = arith.addf %2, %4 : vector<8x16xf32>
    %cst_5 = arith.constant 0.000000e+00 : f32
    %6 = vector.broadcast %cst_5 : f32 to vector<8x16xf32>
    %7 = arith.maximumf %5, %6 : vector<8x16xf32>
    %c0_6 = arith.constant 0 : index
    %c0_7 = arith.constant 0 : index
    %8 = vector.load %arg4[%c0_6, %c0_7] : memref<16x8xf32, #tpu.memory_space<vmem>>, vector<16x8xf32>
    %cst_8 = arith.constant dense<0.000000e+00> : vector<8x8xf32>
    %9 = tpu.matmul %7, %8, %cst_8 {dimension_numbers = #tpu.dot_dimension_numbers<[1], [0], [0], [1], [0, 0, 1, 1], [], []>} : vector<8x16xf32>, vector<16x8xf32>, vector<8x8xf32> -> vector<8x8xf32>
    %c0_9 = arith.constant 0 : index
    %c0_10 = arith.constant 0 : index
    %10 = vector.load %arg5[%c0_9, %c0_10] : memref<1x8xf32, #tpu.memory_space<vmem>>, vector<1x8xf32>
    %11 = vector.broadcast %10 : vector<1x8xf32> to vector<8x8xf32>
    %12 = arith.addf %9, %11 : vector<8x8xf32>
    %cst_11 = arith.constant 0.000000e+00 : f32
    %13 = vector.broadcast %cst_11 : f32 to vector<8x8xf32>
    %14 = arith.maximumf %12, %13 : vector<8x8xf32>
    %c0_12 = arith.constant 0 : index
    %c0_13 = arith.constant 0 : index
    %15 = vector.load %arg6[%c0_12, %c0_13] : memref<8x2xf32, #tpu.memory_space<vmem>>, vector<8x2xf32>
    %cst_14 = arith.constant dense<0.000000e+00> : vector<8x2xf32>
    %16 = tpu.matmul %14, %15, %cst_14 {dimension_numbers = #tpu.dot_dimension_numbers<[1], [0], [0], [1], [0, 0, 1, 1], [], []>} : vector<8x8xf32>, vector<8x2xf32>, vector<8x2xf32> -> vector<8x2xf32>
    %c0_15 = arith.constant 0 : index
    %c0_16 = arith.constant 0 : index
    %17 = vector.load %arg7[%c0_15, %c0_16] : memref<1x2xf32, #tpu.memory_space<vmem>>, vector<1x2xf32>
    %18 = vector.broadcast %17 : vector<1x2xf32> to vector<8x2xf32>
    %19 = arith.addf %16, %18 : vector<8x2xf32>
    %cst_17 = arith.constant 0.000000e+00 : f32
    %20 = vector.broadcast %cst_17 : f32 to vector<8x2xf32>
    %21 = arith.maximumf %19, %20 : vector<8x2xf32>
    %c0_18 = arith.constant 0 : index
    %c0_19 = arith.constant 0 : index
    %22 = vector.load %arg8[%c0_18, %c0_19] : memref<8x2xf32, #tpu.memory_space<vmem>>, vector<8x2xf32>
    tpu.vector_store %arg8[%c0_18, %c0_19], %21 {strides = array<i32>} : memref<8x2xf32, #tpu.memory_space<vmem>>, vector<8x2xf32>,
    return
  }
  func.func @transform_0(%arg0: i32) -> (i32, i32) {
    %c0_i32 = arith.constant 0 : i32
    %c0_i32_0 = arith.constant 0 : i32
    return %arg0, %c0_i32 : i32, i32
  }
  func.func @transform_1(%arg0: i32) -> (i32, i32) {
    %c0_i32 = arith.constant 0 : i32
    %c0_i32_0 = arith.constant 0 : i32
    %c0_i32_1 = arith.constant 0 : i32
    return %c0_i32, %c0_i32_0 : i32, i32
  }
  func.func @transform_2(%arg0: i32) -> (i32, i32) {
    %c0_i32 = arith.constant 0 : i32
    %c0_i32_0 = arith.constant 0 : i32
    %c0_i32_1 = arith.constant 0 : i32
    return %c0_i32, %c0_i32_0 : i32, i32
  }
  func.func @transform_3(%arg0: i32) -> (i32, i32) {
    %c0_i32 = arith.constant 0 : i32
    %c0_i32_0 = arith.constant 0 : i32
    %c0_i32_1 = arith.constant 0 : i32
    return %c0_i32, %c0_i32_0 : i32, i32
  }
  func.func @transform_4(%arg0: i32) -> (i32, i32) {
    %c0_i32 = arith.constant 0 : i32
    %c0_i32_0 = arith.constant 0 : i32
    %c0_i32_1 = arith.constant 0 : i32
    return %c0_i32, %c0_i32_0 : i32, i32
  }
  func.func @transform_5(%arg0: i32) -> (i32, i32) {
    %c0_i32 = arith.constant 0 : i32
    %c0_i32_0 = arith.constant 0 : i32
    %c0_i32_1 = arith.constant 0 : i32
    return %c0_i32, %c0_i32_0 : i32, i32
  }
  func.func @transform_6(%arg0: i32) -> (i32, i32) {
    %c0_i32 = arith.constant 0 : i32
    %c0_i32_0 = arith.constant 0 : i32
    %c0_i32_1 = arith.constant 0 : i32
    return %c0_i32, %c0_i32_0 : i32, i32
  }
  func.func @transform_7(%arg0: i32) -> (i32, i32) {
    %c0_i32 = arith.constant 0 : i32
    %c0_i32_0 = arith.constant 0 : i32
    return %arg0, %c0_i32 : i32, i32
  }
}

</mosaic_0001>

<bundles_post_ra>
// kernel: tpu_custom_call.1
= control target key start
LH: loop header
LB: loop body
LE: loop exit
PB: predicated region body
PF: predicated region fallthrough
CT: control target
= control target key end

     0   :  { %v327_v0 = vmov 0.0   ;;  %vm328_vm0 = vmmov 0   ;;  %vm38_vm1 = vcmask 261120   ;;  %vm122_vm2 = vcmask 130048   ;;  %s408_s1 = inlined_call_operand.vmem [shape: f32[32,16], index: 1, kind: input, shape index: {}]   ;;  %s409_s0 = inlined_call_operand.vmem [shape: f32[8,32], index: 0, kind: input, shape index: {}]   ;;  %s410_s3 = inlined_call_operand.vmem [shape: f32[16,8], index: 3, kind: input, shape index: {}]   ;;  %s411_s2 = inlined_call_operand.vmem [shape: f32[1,16], index: 2, kind: input, shape index: {}]   ;;  %s412_s5 = inlined_call_operand.vmem [shape: f32[8,2], index: 5, kind: input, shape index: {}]   ;;  %s413_s4 = inlined_call_operand.vmem [shape: f32[1,8], index: 4, kind: input, shape index: {}]   ;;  %s414_s6 = inlined_call_operand.vmem [shape: f32[1,2], index: 6, kind: input, shape index: {}]   ;;  %s415_s7 = inlined_call_operand.vmem [shape: f32[8,2], index: 7, kind: output, shape index: {}]  }
   0x1   :  { %302 = vmatprep.subr.mxu0 %v327_v0  ;;  %v30_v1 = vld [vmem:[%s408_s1 + $0x18] sm:$0xff]  ;;  %v29_v2 = vld [vmem:[%s408_s1 + $0x10] sm:$0xff]  ;;  %310 = vmatprep.mubr.msk.f32.mxu0 %vm328_vm0, %v327_v0  ;;  %v28_v3 = vld [vmem:[%s408_s1 + $0x8] sm:$0xff]  ;;  %vm205_vm3 = vcmask 64512   ;;  %vm280_vm4 = vcmask 15360  }
   0x2   :  { %303 = vmatpush3.msra.mxu0 %v30_v1  ;;  %313 = vmatprep.subr.mxu1 %v327_v0  ;;  %v27_v4 = vld [vmem:[%s408_s1] sm:$0xff]  ;;  %v114_v6 = vld [vmem:[%s410_s3 + $0x8] sm:$0xff] }
   0x3   :  { %304 = vmatprep.subr.mxu0 %v327_v0  ;;  %317 = vmatprep.mubr.msk.f32.mxu1 %vm328_vm0, %v327_v0  ;;  %v26_v5 = vld [vmem:[%s409_s0] sm:$0xff] }
   0x4   :  { %305 = vmatpush3.msra.mxu0 %v29_v2  ;;  %314 = vmatpush3.msra.mxu1 %v114_v6  ;;  %v113_v7 = vld [vmem:[%s410_s3] sm:$0xff] }
   0x5   :  { %306 = vmatprep.subr.mxu0 %v327_v0  ;;  %315 = vmatprep.subr.mxu1 %v327_v0  ;;  %v286_v8 = vld [vmem:[%s411_s2] ss:$0 sm:$0xff] }
   0x6   :  { %307 = vmatpush3.msra.mxu0 %v28_v3  ;;  %316 = vmatpush3.msra.mxu1 %v113_v7  ;;  %v197_v13 = vld [vmem:[%s412_s5] sm:$0xff] }
   0x7   :  { %308 = vmatprep.subr.mxu0 %v327_v0  ;;  %320 = vmatprep.subr.mxu1 %v327_v0  ;;  %v288_v14 = vld [vmem:[%s413_s4] ss:$0 sm:$0xff] }
   0x8   :  { %309 = vmatpush3.msra.mxu0 %v27_v4  ;;  %v290_v19 = vld [vmem:[%s414_s6] ss:$0 sm:$0xff] }
   0x9   :  { %311 = vmatmul.mubr.msk.f32.vlgmr.msra.gmra.mxu0 %vm38_vm1, %v26_v5 }
  0xc9   :  { %v108_v9 = vpop.f32.mrf.mxu0 }
  0xca   :  { %v109_v10 = vadd.f32 %v286_v8, %v108_v9 }
  0xcb   :  { %v312_v11 = vpop.f32.mrf.mxu0 }
  0xcc   :  { %v112_v12 = vmax.f32 %v109_v10, 0.0 }
  0xce   :  { %318 = vmatmul.mubr.msk.f32.vlgmr.msra.gmra.mxu1 %vm122_vm2, %v112_v12 }
  0xcf   :  { %322 = vmatprep.mubr.msk.f32.mxu1 %vm328_vm0, %v327_v0  ;;  %321 = vmatpush3.msra.mxu1 %v197_v13 }
 0x18e   :  { %v192_v15 = vpop.f32.mrf.mxu1 }
 0x18f   :  { %v193_v16 = vadd.f32 %v288_v14, %v192_v15 }
 0x190   :  { %v319_v17 = vpop.f32.mrf.mxu1 }
 0x191   :  { %v196_v18 = vmax.f32 %v193_v16, 0.0 }
 0x193   :  { %323 = vmatmul.mubr.msk.f32.vlgmr.msra.gmra.mxu1 %vm205_vm3, %v196_v18 }
 0x253   :  { %v275_v20 = vpop.f32.mrf.mxu1 }
 0x254   :  { %v276_v21 = vadd.f32 %v290_v19, %v275_v20 }
 0x255   :  { %v324_v22 = vpop.f32.mrf.mxu1 }
 0x256   :  { %v279_v23 = vmax.f32 %v276_v21, 0.0 }
 0x258   :  { %281 = vst.msk [vmem:[%s415_s7] sm:$0xff] %vm280_vm4, %v279_v23 }

</bundles_post_ra>
